<compile_context>
chip_gen: v6e
topology: v6e:2x2x1
jax: 0.10.0
libtpu: 0.0.40
codegen_flags: <defaults>
</compile_context>

<pallas_src>
import jax
import jax.numpy as jnp
from jax.experimental import pallas as pl
from jax.experimental.pallas import tpu as pltpu


def _round_up(n, m):
    return ((n + m - 1) // m) * m


def _vmem_capacity_bytes():
    try:
        return int(pltpu.get_tpu_info().vmem_capacity_bytes)
    except Exception:
        return 64 << 20  # conservative (v7x-sized) fallback


def _pick_tf(Fp, target):
    """Largest multiple of 128 that divides Fp and is <= target."""
    best = 128
    c = 128
    while c <= min(target, Fp):
        if Fp % c == 0:
            best = c
        c += 128
    return best


def _make_layer_kernel(separate_acc):
    def kernel(x_ref, w1_ref, b1_ref, w2_ref, b2_ref, out_ref, *scratch):
        """One (m-tile, ffn-chunk) step of  y = relu(x @ W1 + b1) @ W2 + b2."""
        acc_ref = scratch[0] if separate_acc else out_ref
        f = pl.program_id(1)

        @pl.when(f == 0)
        def _():
            # Init the resident accumulator with the broadcast output bias
            # (removes the epilogue bias add).
            acc_ref[...] = jnp.broadcast_to(
                b2_ref[...].astype(jnp.float32), acc_ref.shape)

        # (tm, Hp) @ (Hp, tf) on the MXU, f32 accumulation.
        t = jnp.dot(x_ref[...], w1_ref[...], preferred_element_type=jnp.float32)
        t = jnp.maximum(t + b1_ref[...], 0.0)

        # (tm, tf) @ (tf, Hp) accumulated into the resident (tm, Hp) f32 block.
        acc_ref[...] += jnp.dot(t.astype(w2_ref.dtype), w2_ref[...],
                                preferred_element_type=jnp.float32)

        if separate_acc:
            @pl.when(f == pl.num_programs(1) - 1)
            def _():
                out_ref[...] = acc_ref[...].astype(out_ref.dtype)

    return kernel


def prepare_layer_params(w1, b1, w2, b2, compute_dtype=jnp.bfloat16):
    """Pad weights/biases to lane-dense 128-multiples and cast matmul operands
    to the MXU compute dtype.  Call ONCE at init (keeps the per-call forward
    free of weight-padding HBM traffic)."""
    H, F = w1.shape
    Hp, Fp = _round_up(H, 128), _round_up(F, 128)
    w1p = w1 if (H == Hp and F == Fp) else jnp.pad(w1, ((0, Hp - H), (0, Fp - F)))
    w2p = w2 if (H == Hp and F == Fp) else jnp.pad(w2, ((0, Fp - F), (0, Hp - H)))
    b1p = b1 if F == Fp else jnp.pad(b1, ((0, 0), (0, Fp - F)))
    b2p = b2 if H == Hp else jnp.pad(b2, ((0, 0), (0, Hp - H)))
    return {
        "w1": w1p.astype(compute_dtype),
        "b1": b1p.astype(jnp.float32),
        "w2": w2p.astype(compute_dtype),
        "b2": b2p.astype(jnp.float32),
        "H": H, "F": F, "Hp": Hp, "Fp": Fp,
        "compute_dtype": compute_dtype,
    }


def layer_forward(x, params, *, tm_target=None, tf_target=None):
    """y = relu(x @ w1 + b1) @ w2 + b2.   x: (M, H) -> (M, H)."""
    M, H = x.shape
    assert H == params["H"]
    Hp, Fp = params["Hp"], params["Fp"]
    cdt = params["compute_dtype"]
    out_dtype = x.dtype

    cap = _vmem_capacity_bytes()
    large_vmem = cap >= (96 << 20)           # v5e / v6e (128 MiB) vs v7x (64 MiB)
    if tm_target is None:
        tm_target = 512 if large_vmem else 256
    if tf_target is None:
        tf_target = 1024 if large_vmem else 512

    cdt_size = jnp.dtype(cdt).itemsize
    out_size = jnp.dtype(out_dtype).itemsize
    # f32 outputs: accumulate directly into the resident out block (no scratch).
    separate_acc = jnp.dtype(out_dtype) != jnp.dtype(jnp.float32)

    # Row tile: multiple of 8 sublanes.
    tm = min(tm_target, _round_up(M, 8))
    Mp = _round_up(M, tm)
    # Guarantee >=2 m-tiles when possible so a dual-TensorCore chip (v7x) can
    # shard the "parallel" m axis across both cores.
    if Mp // tm == 1 and tm >= 16:
        tm = _round_up(max(tm // 2, 8), 8)
        Mp = _round_up(M, tm)

    # FFN chunk: largest 128-multiple divisor of Fp <= target.
    tf = _pick_tf(Fp, tf_target)

    def _vmem_est(tm_, tf_):
        # Double-buffered inputs/output + optional f32 accumulator scratch.
        e = 2 * (tm_ * Hp * cdt_size          # x tile
                 + Hp * tf_ * cdt_size        # W1 chunk
                 + tf_ * 4                    # b1 chunk (f32)
                 + tf_ * Hp * cdt_size        # W2 chunk
                 + Hp * 4                     # b2 (f32)
                 + tm_ * Hp * out_size)       # out tile
        if separate_acc:
            e += tm_ * Hp * 4
        return e

    budget = int(0.75 * cap)
    while _vmem_est(tm, tf) > budget and tf > 128:
        tf = _pick_tf(Fp, tf - 128)
    while _vmem_est(tm, tf) > budget and tm > 64:
        tm = _round_up(max(tm // 2, 64), 8)
        Mp = _round_up(M, tm)

    # Per-call activation padding only (weights were padded once at init).
    xp = x
    if (Mp, Hp) != (M, H):
        xp = jnp.pad(x, ((0, Mp - M), (0, Hp - H)))
    xp = xp.astype(cdt)

    grid = (Mp // tm, Fp // tf)
    n_mtiles = Mp // tm

    # Scheduler hint: weights are re-streamed once per m-tile.
    w_bytes = Hp * Fp * cdt_size + Fp * 4 + Fp * Hp * cdt_size + Hp * 4
    bytes_accessed = (Mp * Hp * cdt_size          # x read
                      + Mp * Hp * out_size        # out write
                      + n_mtiles * w_bytes)       # weights per m-tile
    cost = pl.CostEstimate(flops=4 * Mp * Hp * Fp, transcendentals=0,
                           bytes_accessed=int(bytes_accessed))

    vmem_limit = int(min(max(_vmem_est(tm, tf) + (2 << 20), 16 << 20),
                         int(0.92 * cap)))

    kernel = _make_layer_kernel(separate_acc)
    out = pl.pallas_call(
        kernel,
        out_shape=jax.ShapeDtypeStruct((Mp, Hp), out_dtype),
        grid=grid,
        in_specs=[
            pl.BlockSpec((tm, Hp), lambda m, f: (m, 0)),   # x tile: resident across f
            pl.BlockSpec((Hp, tf), lambda m, f: (0, f)),   # W1 chunk: streams
            pl.BlockSpec((1, tf), lambda m, f: (0, f)),    # b1 chunk
            pl.BlockSpec((tf, Hp), lambda m, f: (f, 0)),   # W2 chunk: streams
            pl.BlockSpec((1, Hp), lambda m, f: (0, 0)),    # b2: resident
        ],
        out_specs=pl.BlockSpec((tm, Hp), lambda m, f: (m, 0)),  # resident accumulator
        scratch_shapes=([pltpu.VMEM((tm, Hp), jnp.float32)]
                        if separate_acc else []),
        compiler_params=pltpu.CompilerParams(
            dimension_semantics=("parallel", "arbitrary"),
            vmem_limit_bytes=vmem_limit,
        ),
        cost_estimate=cost,
    )(xp, params["w1"], params["b1"], params["w2"], params["b2"])

    return out[:M, :H]


if __name__ == "__main__":
    hidden_size = 32
    batch, seq = 2, 8
    H, F = hidden_size, hidden_size * 4

    key = jax.random.PRNGKey(0)
    kx, kw1, kb1, kw2, kb2 = jax.random.split(key, 5)

    # PyTorch nn.Linear default init: U(-1/sqrt(fan_in), 1/sqrt(fan_in)).
    bound1 = 1.0 / (H ** 0.5)
    bound2 = 1.0 / (F ** 0.5)
    # Weights stored pre-transposed as (in, out): y = x @ W + b == x @ W_pt.T + b.
    w1 = jax.random.uniform(kw1, (H, F), jnp.float32, -bound1, bound1)
    b1 = jax.random.uniform(kb1, (1, F), jnp.float32, -bound1, bound1)
    w2 = jax.random.uniform(kw2, (F, H), jnp.float32, -bound2, bound2)
    b2 = jax.random.uniform(kb2, (1, H), jnp.float32, -bound2, bound2)

    x = jax.random.normal(kx, (batch, seq, H), jnp.float32)
    x2d = x.reshape(batch * seq, H)

    params = prepare_layer_params(w1, b1, w2, b2, compute_dtype=jnp.bfloat16)
    out2d = layer_forward(x2d, params)
    out = out2d.reshape(batch, seq, H)
    jax.block_until_ready(out)

    # Reference mirroring the kernel's mixed-precision operand casts (bf16
    # operands, f32 accumulation) -> tight tolerance.
    f32 = jnp.float32
    xb = x2d.astype(jnp.bfloat16).astype(f32)
    w1b = w1.astype(jnp.bfloat16).astype(f32)
    w2b = w2.astype(jnp.bfloat16).astype(f32)
    t_ref = jnp.maximum(xb @ w1b + b1, 0.0).astype(jnp.bfloat16).astype(f32)
    ref_mp = (t_ref @ w2b + b2).reshape(batch, seq, H)
    assert jnp.allclose(out, ref_mp, atol=2e-3, rtol=2e-3), \
        "mismatch vs mixed-precision reference"

    # Coarse sanity check against the pure-f32 PyTorch math (bf16 operands =>
    # expected small mixed-precision deviation, hence looser tolerance).
    ref_f32 = (jnp.maximum(x2d @ w1 + b1, 0.0) @ w2 + b2).reshape(batch, seq, H)
    assert jnp.allclose(out, ref_f32, atol=1e-1, rtol=1e-1), \
        "mismatch vs f32 reference"

    print("KERNEL_OK")
</pallas_src>

<mosaic_0001>
module attributes {stable_mosaic.version = 11 : i64} {
  func.func @kernel(%arg0: i32, %arg1: i32, %arg2: memref<8x128xbf16, #tpu.memory_space<vmem>>, %arg3: memref<128x128xbf16, #tpu.memory_space<vmem>>, %arg4: memref<1x128xf32, #tpu.memory_space<vmem>>, %arg5: memref<128x128xbf16, #tpu.memory_space<vmem>>, %arg6: memref<1x128xf32, #tpu.memory_space<vmem>>, %arg7: memref<8x128xf32, #tpu.memory_space<vmem>>) attributes {dimension_semantics = [#tpu.dimension_semantics<parallel>, #tpu.dimension_semantics<arbitrary>], iteration_bounds = array<i64: 2, 1>, scalar_prefetch = 0 : i64, scratch_operands = 0 : i64, tpu.core_type = #tpu.core_type<tc>, window_params = [{transform_indices = @transform_0, window_bounds = array<i64: 8, 128>}, {transform_indices = @transform_1, window_bounds = array<i64: 128, 128>}, {transform_indices = @transform_2, window_bounds = array<i64: 1, 128>}, {transform_indices = @transform_3, window_bounds = array<i64: 128, 128>}, {pipeline_mode = #tpu.pipeline_mode<synchronous>, transform_indices = @transform_4, window_bounds = array<i64: 1, 128>}, {transform_indices = @transform_5, window_bounds = array<i64: 8, 128>}]} {
    %c0_i32 = arith.constant 0 : i32
    %0 = arith.cmpi eq, %arg1, %c0_i32 : i32
    %1 = arith.extui %0 : i1 to i32
    %c0_i32_0 = arith.constant 0 : i32
    %2 = arith.cmpi ne, %1, %c0_i32_0 : i32
    scf.if %2 {
      %c0_14 = arith.constant 0 : index
      %c0_15 = arith.constant 0 : index
      %17 = vector.load %arg6[%c0_14, %c0_15] : memref<1x128xf32, #tpu.memory_space<vmem>>, vector<1x128xf32>
      %18 = vector.shape_cast %17 : vector<1x128xf32> to vector<1x128xf32>
      %19 = vector.broadcast %18 : vector<1x128xf32> to vector<8x128xf32>
      %c0_16 = arith.constant 0 : index
      %c0_17 = arith.constant 0 : index
      %20 = vector.load %arg7[%c0_16, %c0_17] : memref<8x128xf32, #tpu.memory_space<vmem>>, vector<8x128xf32>
      tpu.vector_store %arg7[%c0_16, %c0_17], %19 {strides = array<i32>} : memref<8x128xf32, #tpu.memory_space<vmem>>, vector<8x128xf32>,
    } else {
    }
    %c0 = arith.constant 0 : index
    %c0_1 = arith.constant 0 : index
    %3 = vector.load %arg2[%c0, %c0_1] : memref<8x128xbf16, #tpu.memory_space<vmem>>, vector<8x128xbf16>
    %c0_2 = arith.constant 0 : index
    %c0_3 = arith.constant 0 : index
    %4 = vector.load %arg3[%c0_2, %c0_3] : memref<128x128xbf16, #tpu.memory_space<vmem>>, vector<128x128xbf16>
    %cst = arith.constant dense<0.000000e+00> : vector<8x128xf32>
    %5 = tpu.matmul %3, %4, %cst {dimension_numbers = #tpu.dot_dimension_numbers<[1], [0], [0], [1], [0, 0, 1, 1], [], []>} : vector<8x128xbf16>, vector<128x128xbf16>, vector<8x128xf32> -> vector<8x128xf32>
    %c0_4 = arith.constant 0 : index
    %c0_5 = arith.constant 0 : index
    %6 = vector.load %arg4[%c0_4, %c0_5] : memref<1x128xf32, #tpu.memory_space<vmem>>, vector<1x128xf32>
    %7 = vector.broadcast %6 : vector<1x128xf32> to vector<8x128xf32>
    %8 = arith.addf %5, %7 : vector<8x128xf32>
    %cst_6 = arith.constant 0.000000e+00 : f32
    %9 = vector.broadcast %cst_6 : f32 to vector<8x128xf32>
    %10 = arith.maximumf %8, %9 : vector<8x128xf32>
    %c0_7 = arith.constant 0 : index
    %c0_8 = arith.constant 0 : index
    %11 = vector.load %arg7[%c0_7, %c0_8] : memref<8x128xf32, #tpu.memory_space<vmem>>, vector<8x128xf32>
    %12 = arith.truncf %10 : vector<8x128xf32> to vector<8x128xbf16>
    %c0_9 = arith.constant 0 : index
    %c0_10 = arith.constant 0 : index
    %13 = vector.load %arg5[%c0_9, %c0_10] : memref<128x128xbf16, #tpu.memory_space<vmem>>, vector<128x128xbf16>
    %cst_11 = arith.constant dense<0.000000e+00> : vector<8x128xf32>
    %14 = tpu.matmul %12, %13, %cst_11 {dimension_numbers = #tpu.dot_dimension_numbers<[1], [0], [0], [1], [0, 0, 1, 1], [], []>} : vector<8x128xbf16>, vector<128x128xbf16>, vector<8x128xf32> -> vector<8x128xf32>
    %15 = arith.addf %11, %14 : vector<8x128xf32>
    %c0_12 = arith.constant 0 : index
    %c0_13 = arith.constant 0 : index
    %16 = vector.load %arg7[%c0_12, %c0_13] : memref<8x128xf32, #tpu.memory_space<vmem>>, vector<8x128xf32>
    tpu.vector_store %arg7[%c0_12, %c0_13], %15 {strides = array<i32>} : memref<8x128xf32, #tpu.memory_space<vmem>>, vector<8x128xf32>,
    return
  }
  func.func @transform_0(%arg0: i32, %arg1: i32) -> (i32, i32) {
    %c0_i32 = arith.constant 0 : i32
    %c0_i32_0 = arith.constant 0 : i32
    return %arg0, %c0_i32 : i32, i32
  }
  func.func @transform_1(%arg0: i32, %arg1: i32) -> (i32, i32) {
    %c0_i32 = arith.constant 0 : i32
    %c0_i32_0 = arith.constant 0 : i32
    return %c0_i32, %arg1 : i32, i32
  }
  func.func @transform_2(%arg0: i32, %arg1: i32) -> (i32, i32) {
    %c0_i32 = arith.constant 0 : i32
    %c0_i32_0 = arith.constant 0 : i32
    return %c0_i32, %arg1 : i32, i32
  }
  func.func @transform_3(%arg0: i32, %arg1: i32) -> (i32, i32) {
    %c0_i32 = arith.constant 0 : i32
    %c0_i32_0 = arith.constant 0 : i32
    return %arg1, %c0_i32 : i32, i32
  }
  func.func @transform_4(%arg0: i32, %arg1: i32) -> (i32, i32) {
    %c0_i32 = arith.constant 0 : i32
    %c0_i32_0 = arith.constant 0 : i32
    %c0_i32_1 = arith.constant 0 : i32
    return %c0_i32, %c0_i32_0 : i32, i32
  }
  func.func @transform_5(%arg0: i32, %arg1: i32) -> (i32, i32) {
    %c0_i32 = arith.constant 0 : i32
    %c0_i32_0 = arith.constant 0 : i32
    return %arg0, %c0_i32 : i32, i32
  }
}

</mosaic_0001>

<bundles_post_ra>
// kernel: tpu_custom_call.1
= control target key start
LH: loop header
LB: loop body
LE: loop exit
PB: predicated region body
PF: predicated region fallthrough
CT: control target
= control target key end

     0   :  { %s1269_s0 = inlined_call_operand.hbm [shape: bf16[16,128], index: 0, kind: input, shape index: {}]   ;;  %s1270_s1 = inlined_call_operand.hbm [shape: bf16[128,128], index: 1, kind: input, shape index: {}]   ;;  %s1271_s2 = inlined_call_operand.vmem [shape: f32[1,128], index: 2, kind: input, shape index: {}]   ;;  %s1272_s3 = inlined_call_operand.hbm [shape: bf16[128,128], index: 3, kind: input, shape index: {}]   ;;  %s1273_s4 = inlined_call_operand.vmem [shape: f32[1,128], index: 4, kind: input, shape index: {}]   ;;  %s1274_s5 = inlined_call_operand.hbm [shape: f32[16,128], index: 5, kind: output, shape index: {}]  }
   0x1   :  { %1278 = sst [smem:[#allocation12_spill]] %s1270_s1 }
   0x2   :  { %10 = vsyncpa [#allocation3], 0 }
   0x3   :  { %12 = vsyncpa [#allocation3 + $0x1], 0 }
   0x4   :  { %13 = vsyncpa [#allocation6], 0 }
   0x5   :  { %14 = vsyncpa [#allocation4], 0 }
   0x6   :  { %16 = vsyncpa [#allocation4 + $0x1], 0  ;;  %s1073_s18 = smov 0   ;;  %s1075_s19 = smov 0  }
   0x7   :  { %s1077_s20 = smov 0   ;;  %s1079_s21 = smov 0  }
   0x8   :  { %s1081_s22 = smov 0   ;;  %s1083_s23 = smov 0  }
   0x9 LB: > { %s672_s24 = sadd.s32 4294967295, %s1033_s23   ;;  %s673_s25 = sadd.s32 4294967294, %s1033_s23   ;;  %s1033_s23 = sphi %s1083_s23, %s22_s23   ;;  %s1029_s22 = sphi %s1081_s22, %s1296_s22   ;;  %s1025_s21 = sphi %s1079_s21, %s1295_s21   ;;  %s1021_s20 = sphi %s1077_s20, %s1294_s20   ;;  %s1017_s19 = sphi %s1075_s19, %s1293_s19   ;;  %s1013_s18 = sphi %s1073_s18, %s1292_s18  }
   0xa   : > { %p54_p0 = scmp.ne.s32.totalorder %s1017_s19, %s1013_s18  ;;  %p1107_p1 = scmp.eq.s32.totalorder %s672_s24, 0 }
   0xb   : > { %p1111_p2 = scmp.eq.s32.totalorder %s672_s24, 1  ;;  %p183_p3 = scmp.eq.s32.totalorder %s673_s25, 1 }
   0xc   : > { %s1279_s26 = scalar_select %p1107_p1, 1, 0 }
   0xd   : > { %p1117_p4 = por %p1107_p1, %p54_p0  ;;  %p674_p5 = scmp.ge.s32.totalorder %s1033_s23, 1 }
   0xe   : > { %p1122_p6 = por %p183_p3, %p54_p0  ;;  %p190_p7 = scmp.lt.s32.totalorder %s1033_s23, 3 }
   0xf   : > { %s1281_s28 = scalar_select %p1117_p4, 1, 0 }
  0x10   : > { %s1282_s29 = scalar_select %p1122_p6, 1, 0 }
  0x11   : > { %p1127_p8 = pnand %p674_p5, %p190_p7  ;;  %s1035_s6 = smov [#allocation5]  }
  0x12   : > { %s204_s7 = sshll.u32 %s1035_s6, 4  ;;  %s1036_s9 = smov [#allocation7]   ;;  %s205_s7 = int_to_ptr.vmem [resolvable:$true] %s204_s7 }
  0x13   : > { %p778_p9 = pneg %p1127_p8  ;;  %s226_s10 = sshll.u32 %s1036_s9, 4  ;;  %s227_s10 = int_to_ptr.vmem [resolvable:$true] %s226_s10 }
  0x14   : > { %s880_s11 = scalar_lea.vmem %s205_s7, 1024  ;;  %p888_p5 = scmp.lt.s32.totalorder %s205_s7, %s205_s7 }
  0x15   : > { %p1136_p11 = pnand %p778_p9, %p1107_p1  ;;  %p881_p13 = scmp.ne.s32.totalorder %s205_s7, %s880_s11 }
  0x16   : > { %p889_p7 = scmp.lt.s32.totalorder %s880_s11, %s880_s11 }
  0x17   : > { %p871_p12 = pneg %p1136_p11 }
  0x18   : > { %p890_p10 = por %p889_p7, %p888_p5 }
  0x19   : > { %p883_p0 = pnand %p881_p13, %p871_p12 }
  0x1b   : > { %p884_p3 = pneg %p883_p0 }
  0x1d   : > { %p891_p9 = pnand %p890_p10, %p884_p3 }
  0x1f   : > { %894 = shalt.err (!%p891_p9)
}
  0x20   : > { %s1037_s12 = smov 64   ;;  %s1038_s13 = smov 4  }
  0x21   : > { %s1285_s1 = sld [smem:[#allocation12_spill]]  ;;  %s906_s16 = scalar_lea.vmem %s227_s10, 1024 }
  0x22   : > { %p907_p6 = scmp.ne.s32.totalorder %s227_s10, %s906_s16  ;;  %p914_p1 = scmp.lt.s32.totalorder %s227_s10, %s227_s10 }
  0x23   : > { %p915_p4 = scmp.lt.s32.totalorder %s906_s16, %s906_s16 }
  0x24   : > { %p909_p13 = pnand %p907_p6, %p871_p12 }
  0x25   : > { %p916_p5 = por %p915_p4, %p914_p1 }
  0x26   : > { %p910_p0 = pneg %p909_p13 }
  0x27   : > { %781 = dma.hbm_to_vmem [thread:$0]  (!%p1136_p11), %s1285_s1, 1024, %s205_s7, [#allocation6], %s1037_s12, %s1037_s12, %s1038_s13  }
  0x28   : > { %p917_p10 = pnand %p916_p5, %p910_p0 }
  0x2a   : > { %920 = shalt.err (!%p917_p10)
}
  0x2b   : > { %784 = dma.hbm_to_vmem [thread:$0]  (!%p1136_p11), %s1272_s3, 1024, %s227_s10, [#allocation6], %s1037_s12, %s1037_s12, %s1038_s13  }
  0x2c   : > { %s34_s25 = sadd.s32 1, %s1029_s22  ;;  %s41_s6 = sadd.s32 1, %s1021_s20 }
  0x2d   : > { %p36_p1 = scmp.ge.s32.totalorder %s34_s25, 2  ;;  %p48_p4 = scmp.ne.s32.totalorder %s1021_s20, %s1017_s19 }
  0x2e   : > { %p49_p6 = scmp.eq.s32.totalorder %s1033_s23, 0  ;;  %p795_p12 = scmp.lt.s32.totalorder %s1033_s23, 2 }
  0x2f   : > { %s1298_s25 = smov (%p36_p1, %s34_s25), 0  ;;  %p1168_p7 = por %p1111_p2, %p48_p4 }
  0x30   : > { %p50_p3 = por %p49_p6, %p48_p4  ;;  %s38_s8 = ssub.s32 %s1029_s22, %s1298_s25 }
  0x31   : > { %s243_s9 = sand.u32 1, %s1021_s20   ;;  %p39_p9 = scmp.eq.s32.totalorder %s38_s8, 0 }
  0x32   : > { %s679_s10 = sshll.u32 %s243_s9, 2  ;;  %s680_s11 = sshll.u32 %s1029_s22, 6 }
  0x33   : > { %s1177_s12 = scalar_select %p39_p9, %s1021_s20, %s41_s6  }
  0x34   : > { %s252_s15 = scalar_lea.hbm %s1269_s0, %s680_s11  ;;  %s247_s16 = scalar_lea.vmem [#allocation2], %s679_s10 }
  0x35   : > { %s254_s17 = sshll.u32 %s247_s16, 4  ;;  %p1184_p11 = pnand %p795_p12, %p50_p3  ;;  %s255_s17 = int_to_ptr.vmem [resolvable:$true] %s254_s17 }
  0x36   : > { %s244_s24 = scalar_lea.sflag [#allocation3], %s243_s9  ;;  %s934_s8 = scalar_lea.vmem %s255_s17, 64 }
  0x37   : > { %p923_p2 = pneg %p1184_p11  ;;  %p935_p13 = scmp.ne.s32.totalorder %s255_s17, %s934_s8 }
  0x38   : > { %s1039_s6 = smov [#allocation2]  }
  0x39   : > { %p937_p0 = pnand %p935_p13, %p923_p2  ;;  %s939_s1 = sshll.u32 %s1039_s6, 4  ;;  %s940_s1 = int_to_ptr.vmem [resolvable:$false] %s939_s1 }
  0x3a   : > { %s941_s11 = scalar_lea.vmem %s940_s1, 128  ;;  %p942_p10 = scmp.lt.s32.totalorder %s255_s17, %s940_s1 }
  0x3b   : > { %p938_p5 = pneg %p937_p0  ;;  %p943_p1 = scmp.lt.s32.totalorder %s941_s11, %s934_s8 }
  0x3d   : > { %p944_p4 = por %p943_p1, %p942_p10 }
  0x3f   : > { %p945_p6 = pnand %p944_p4, %p938_p5 }
  0x41   : > { %948 = shalt.err (!%p945_p6)
}
  0x42   : > { %788 = dma.hbm_to_vmem [thread:$0]  (!%p1184_p11), %s252_s15, 64, %s255_s17, %s244_s24  }
  0x43   : > { %263 = sbr.rel (%p1127_p8) target bundleno = 518 (0x206), region = 40  ;;  %s1195_s9 = sand.u32 (!%p1127_p8), 1, %s1017_s19  }
  0x44   : > { %s682_s10 = sshll.u32 (!%p1127_p8), %s1195_s9, 2  ;;  %s266_s13 = scalar_lea.sflag (!%p1127_p8), [#allocation3], %s1195_s9 }
  0x45   : > { %s1199_s14 = scalar_lea.vmem (!%p1127_p8), [#allocation2], %s682_s10  ;;  %p1288_p12 = scmp.ne.s32.totalorder (!%p1127_p8), %s1281_s28, 0 }
  0x48   : > { %1000 = dma.done.wait (%p1288_p12), %s266_s13, 64  }
  0x49   : > { %1002 = vsyncadd (%p1288_p12), %s266_s13, 4294967232  ;;  %p1289_p3 = scmp.ne.s32.totalorder %s1279_s26, 0 }
  0x4b   : > { %1004 = dma.done.wait (%p1289_p3), [#allocation6], 2048  }
  0x4c   : > { %1006 = vsyncadd (%p1289_p3), [#allocation6], 4294965248  ;;  %v1040_v0 = vmov 0.0   ;;  %vm1041_vm0 = vmmov 0   ;;  %v853_v1 = vld [vmem:[#allocation5 + $0x38] sm:$0xff]   ;;  %v854_v2 = vld [vmem:[#allocation5 + $0x30] sm:$0xff]  }
  0x4d   : > { %726 = vmatprep.subr.bf16.mxu0 %v1040_v0  ;;  %742 = vmatprep.mubr.msk.bf16.mxu0 %vm1041_vm0, %v1040_v0  ;;  %v855_v3 = vld [vmem:[#allocation5 + $0x28] sm:$0xff]   ;;  %v861_v4 = vld [vmem:[#allocation7 + $0x38] sm:$0xff]   ;;  %v856_v5 = vld [vmem:[#allocation5 + $0x20] sm:$0xff]   ;;  %s685_s28 = sshll.u32 %s1195_s9, 3  ;;  %s705_s16 = sshll.u32 %s1025_s21, 7 }
  0x4e   : > { %746 = vmatprep.subr.bf16.mxu1 %v1040_v0  ;;  %762 = vmatprep.mubr.msk.bf16.mxu1 %vm1041_vm0, %v1040_v0  ;;  %v862_v6 = vld [vmem:[#allocation7 + $0x30] sm:$0xff]   ;;  %v857_v7 = vld [vmem:[#allocation5 + $0x18] sm:$0xff]   ;;  %v863_v8 = vld [vmem:[#allocation7 + $0x28] sm:$0xff]   ;;  %s306_s17 = scalar_lea.vmem [#allocation8], %s685_s28  ;;  %s1221_s6 = scalar_lea.hbm %s1274_s5, %s705_s16 }
  0x4f   : > { %727 = vmatpush3.bf16.msra.mxu0 %v853_v1  ;;  %747 = vmatpush3.bf16.msra.mxu1 %v861_v4  ;;  %v858_v9 = vld [vmem:[#allocation5 + $0x10] sm:$0xff]   ;;  %v864_v10 = vld [vmem:[#allocation7 + $0x20] sm:$0xff]   ;;  %v859_v11 = vld [vmem:[#allocation5 + $0x8] sm:$0xff]   ;;  %s559_s27 = sshll.u32 %s306_s17, 4  ;;  %s546_s11 = scalar_lea.sflag [#allocation4], %s1195_s9  ;;  %s1223_s27 = int_to_ptr.vmem [resolvable:$true] %s559_s27 }
  0x50   : > { %728 = vmatprep.subr.bf16.mxu0 %v1040_v0  ;;  %748 = vmatprep.subr.bf16.mxu1 %v1040_v0  ;;  %v865_v12 = vld [vmem:[#allocation7 + $0x18] sm:$0xff]   ;;  %v860_v13 = vld [vmem:[#allocation5] sm:$0xff]   ;;  %v866_v14 = vld [vmem:[#allocation7 + $0x10] sm:$0xff]   ;;  %s949_s10 = scalar_lea.vmem %s1223_s27, 128  ;;  %s1042_s21 = smov [#allocation8]  }
  0x51   : > { %v324_v15 = vld [vmem:[%s1199_s14] sm:$0xf]  ;;  %v867_v16 = vld [vmem:[#allocation7 + $0x8] sm:$0xff]   ;;  %v868_v17 = vld [vmem:[#allocation7] sm:$0xff]   ;;  %p950_p8 = scmp.ne.s32.totalorder %s1223_s27, %s949_s10  ;;  %s953_s13 = sshll.u32 %s1042_s21, 4  ;;  %s954_s13 = int_to_ptr.vmem [resolvable:$false] %s953_s13 }
  0x52   : > { %v687_v18 = vld [vmem:[%s1271_s2] ss:$0 sm:$0xff]  ;;  %s955_s14 = scalar_lea.vmem %s954_s13, 256  ;;  %p956_p2 = scmp.lt.s32.totalorder %s1223_s27, %s954_s13 }
  0x53   : > { %729 = vmatpush3.bf16.msra.mxu0 %v854_v2  ;;  %749 = vmatpush3.bf16.msra.mxu1 %v862_v6  ;;  %v686_v26 = vld [vmem:[%s1273_s4] ss:$0 sm:$0xff]  ;;  %p951_p9 = pnand %p950_p8, %p1168_p7  ;;  %p957_p13 = scmp.lt.s32.totalorder %s955_s14, %s949_s10 }
  0x54   : > { %730 = vmatprep.subr.bf16.mxu0 %v1040_v0  ;;  %750 = vmatprep.subr.bf16.mxu1 %v1040_v0 }
  0x55   : > { %p952_p11 = pneg %p951_p9  ;;  %p958_p0 = por %p957_p13, %p956_p2 }
  0x57   : > { %731 = vmatpush3.bf16.msra.mxu0 %v855_v3  ;;  %751 = vmatpush3.bf16.msra.mxu1 %v863_v8  ;;  %p959_p5 = pnand %p958_p0, %p952_p11 }
  0x58   : > { %732 = vmatprep.subr.bf16.mxu0 %v1040_v0  ;;  %752 = vmatprep.subr.bf16.mxu1 %v1040_v0 }
  0x5b   : > { %733 = vmatpush3.bf16.msra.mxu0 %v856_v5  ;;  %753 = vmatpush3.bf16.msra.mxu1 %v864_v10 }
  0x5c   : > { %734 = vmatprep.subr.bf16.mxu0 %v1040_v0  ;;  %754 = vmatprep.subr.bf16.mxu1 %v1040_v0 }
  0x5f   : > { %735 = vmatpush3.bf16.msra.mxu0 %v857_v7  ;;  %755 = vmatpush3.bf16.msra.mxu1 %v865_v12 }
  0x60   : > { %736 = vmatprep.subr.bf16.mxu0 %v1040_v0  ;;  %756 = vmatprep.subr.bf16.mxu1 %v1040_v0 }
  0x63   : > { %737 = vmatpush3.bf16.msra.mxu0 %v858_v9  ;;  %757 = vmatpush3.bf16.msra.mxu1 %v866_v14 }
  0x64   : > { %738 = vmatprep.subr.bf16.mxu0 %v1040_v0  ;;  %758 = vmatprep.subr.bf16.mxu1 %v1040_v0 }
  0x67   : > { %739 = vmatpush3.bf16.msra.mxu0 %v859_v11  ;;  %759 = vmatpush3.bf16.msra.mxu1 %v867_v16 }
  0x68   : > { %740 = vmatprep.subr.bf16.mxu0 %v1040_v0  ;;  %760 = vmatprep.subr.bf16.mxu1 %v1040_v0 }
  0x6b   : > { %741 = vmatpush3.bf16.msra.mxu0 %v860_v13  ;;  %761 = vmatpush3.bf16.msra.mxu1 %v868_v17 }
  0x6e   : > { %743 = vmatmul.mubr.bf16.vlgmr.msra.gmra.mxu0 %v324_v15 }
 0x12e   : > { %v430_v19 = vpop.f32.mrf.mxu0 }
 0x12f   : > { %v431_v20 = vadd.f32 %v687_v18, %v430_v19 }
 0x130   : > { %v744_v21 = vpop.f32.mrf.mxu0 }
 0x131   : > { %v436_v22 = vmax.f32 %v431_v20, 0.0 }
 0x132   : > { %v433_v23 = vpop.f32.mrf.mxu0 }
 0x133   : > { %v438_v24 = vpack.c.bf16 %v436_v22, %v436_v22 }
 0x134   : > { %v745_v25 = vpop.f32.mrf.mxu0 }
 0x135   : > { %763 = vmatmul.mubr.bf16.vlgmr.msra.gmra.mxu1 %v438_v24 }
 0x1f5   : > { %v537_v27 = vpop.f32.mrf.mxu1 }
 0x1f6   : > { %v543_v28 = vadd.f32 %v686_v26, %v537_v27 }
 0x1f7   : > { %v764_v29 = vpop.f32.mrf.mxu1 }
 0x1f8   : > { %544 = vst [vmem:[%s306_s17] sm:$0xff] %v543_v28 }
 0x1f9   : > { %v540_v30 = vpop.f32.mrf.mxu1 }
 0x1fa   : > { %962 = shalt.err (!%p959_p5)
}
 0x1fb   : > { %s963_s1 = scalar_lea.hbm %s1221_s6, 128  ;;  %s967_s28 = scalar_lea.hbm %s1274_s5, 256 }
 0x1fc   : > { %p964_p10 = scmp.ne.s32.totalorder %s1221_s6, %s963_s1  ;;  %p968_p6 = scmp.lt.s32.totalorder %s1221_s6, %s1274_s5 }
 0x1fd   : > { %p969_p12 = scmp.lt.s32.totalorder %s967_s28, %s963_s1 }
 0x1fe   : > { %p965_p1 = pnand %p964_p10, %p1168_p7 }
 0x1ff   : > { %p970_p3 = por %p969_p12, %p968_p6 }
 0x200   : > { %p966_p4 = pneg %p965_p1 }
 0x202   : > { %p971_p8 = pnand %p970_p3, %p966_p4 }
 0x204   : > { %974 = shalt.err (!%p971_p8)
}
 0x205   : > { %776 = dma.vmem_to_hbm [thread:$0]  (%p1168_p7), %s1223_s27, 128, %s1221_s6, %s546_s11   ;;  %v765_v31 = vpop.f32.mrf.mxu1 }
 0x206 PF: > { %s571_s16 = sand.u32 1, %s1013_s18   ;;  %p1290_p9 = scmp.ne.s32.totalorder %s1282_s29, 0 }
 0x207   : > { %p1291_p11 = scmp.ge.s32.totalorder %s1033_s23, 2  ;;  %s572_s17 = scalar_lea.sflag [#allocation4], %s571_s16 }
 0x209   : > { %p790_p2 = pnand %p1291_p11, %p1290_p9 }
 0x20b   : > { %p791_p13 = pneg %p790_p2 }
 0x20d   : > { %1008 = dma.done.wait (%p791_p13), %s572_s17, 128  }
 0x20e   : > { %1010 = vsyncadd (%p791_p13), %s572_s17, 4294967168  ;;  %s22_s23 = sadd.s32 1, %s1033_s23   ;;  %s1292_s18 = smov %s1017_s19 }
 0x20f   : > { %p19_p0 = scmp.ge.s32.totalorder %s22_s23, 4   ;;  %s1293_s19 = smov %s1021_s20 }
 0x210   : > { %s1294_s20 = smov %s1177_s12  ;;  %s1295_s21 = smov %s1029_s22 }
 0x211   : > { %s1296_s22 = smov %s1298_s25  ;;  %21 = sbr.rel (!%p19_p0) target bundleno = 9 (0x9), region = 102 }
 0x216   :  { %577 = vsyncpa [#allocation3], 1 }
 0x217   :  { %579 = vsyncpa [#allocation3 + $0x1], 1 }
 0x218   :  { %580 = vsyncpa [#allocation6], 1 }
 0x219   :  { %581 = vsyncpa [#allocation4], 1 }
 0x21a   :  { %583 = vsyncpa [#allocation4 + $0x1], 1 }

</bundles_post_ra>
